<compile_context>
chip_gen: v7x
topology: tpu7x:2x2x1
jax: 0.10.0
libtpu: 0.0.40
codegen_flags: <defaults>
</compile_context>

<pallas_src>
import functools
import math

import jax
import jax.numpy as jnp
from jax.experimental import pallas as pl
from jax.experimental.pallas import tpu as pltpu

ALPHA = 0.5
GAMMA = 2                      # integer exponent -> explicit square in-kernel
# With ALPHA == 0.5 the per-element weight ALPHA*t + (1-ALPHA)*(1-t) is the
# constant below; it is applied once to the final sum instead of per element.
_W_CONST = 0.5

LANES = 128                    # lane width of the reshaped slab
DEFAULT_BLOCK_ROWS = 4096      # (4096, 128) f32 tile = 2 MiB per input per buffer


def _round_up(x, m):
    return ((x + m - 1) // m) * m


@functools.lru_cache(maxsize=None)
def _num_tensorcores():
    """Best-effort TensorCores-per-chip (2 on v7x, 1 on v5e/v6e); fallback 1.

    Falling back to 1 is the safe choice: no duplicated-block DMA, no mask.
    """
    try:
        info = pltpu.get_tpu_info()
    except Exception:
        return 1
    if info is None:
        return 1
    for name in ("num_tensorcores", "tensorcore_count", "num_cores",
                 "core_count", "cores_per_chip", "num_cores_per_chip"):
        try:
            n = int(getattr(info, name))
        except (AttributeError, TypeError, ValueError):
            continue
        if n in (1, 2):
            return n
    return 1


def _focal_loss_kernel(x_ref, t_ref, out_ref, acc_ref, *,
                       block_rows, blocks_per_split, full_rows, tail_lanes,
                       need_mask):
    i = pl.program_id(0)    # core-split axis
    j = pl.program_id(1)    # reduction axis over row-blocks ("arbitrary")

    @pl.when(j == 0)
    def _init():
        acc_ref[...] = jnp.zeros_like(acc_ref)

    # Cast in-kernel so the wrapper never adds an extra HBM astype pass
    # (bf16 producers can stream at half the HBM bytes).
    x = x_ref[...].astype(jnp.float32)
    t = t_ref[...].astype(jnp.float32)

    # Sign-folded focal BCE (exact for binary targets, matching the reference's
    # `pt[t == 0] = 1 - p` semantics):
    #   z    = x if t==0 else -x
    #   q    = 1 - pt = sigmoid(z)
    #   bce  = max(x,0) - x*t + log(1+exp(-|x|)) = max(z,0) + log(1+exp(-|z|))
    #   elem = q*q*bce          (constant 0.5 alpha factor folded into wrapper)
    z = jnp.where(t == 0.0, x, -x)
    e = jnp.exp(-jnp.abs(x))                    # == exp(-|z|)
    d = 1.0 + e
    r = pl.reciprocal(d, approx=True)
    r = r * (2.0 - d * r)                       # one Newton step -> ~f32 exact
    q = jnp.where(z >= 0.0, r, e * r)           # sigmoid(z)
    bce = jnp.maximum(z, 0.0) + jnp.log(d)
    contrib = (q * q) * bce

    # Fold the (block_rows, 128) tile onto the resident (8, 128) accumulator:
    # lane/sublane-parallel partial sums, no per-step cross-lane reduce.  The
    # reshape is (8,128)-tile aligned, so it is a view, not a VMEM copy.
    def _accumulate(vals):
        acc_ref[...] += jnp.sum(vals.reshape(block_rows // 8, 8, LANES), axis=0)

    if need_mask:
        # Only boundary tiles (partial DMA edge block, lane-padded partial row,
        # or a clamped duplicated block) pay for the mask; interior tiles take
        # the unmasked fast path.
        logical_block = i * blocks_per_split + j
        boundary = (logical_block + 1) * block_rows > full_rows

        @pl.when(boundary)
        def _masked():
            row = (logical_block * block_rows
                   + jax.lax.broadcasted_iota(jnp.int32, contrib.shape, 0))
            valid = row < full_rows
            if tail_lanes > 0:
                lane = jax.lax.broadcasted_iota(jnp.int32, contrib.shape, 1)
                valid = valid | ((row == full_rows) & (lane < tail_lanes))
            _accumulate(jnp.where(valid, contrib, 0.0))

        @pl.when(jnp.logical_not(boundary))
        def _unmasked():
            _accumulate(contrib)
    else:
        _accumulate(contrib)

    @pl.when(j == pl.num_programs(1) - 1)
    def _finalize():
        # Single cross-lane reduce + scalar store, once per core split.
        out_ref[0, 0] = jnp.sum(acc_ref[...])


def focal_loss(logits, targets, *, block_rows=DEFAULT_BLOCK_ROWS, num_splits=None):
    """FocalLoss.forward: logits/targets of identical shape -> scalar mean loss."""
    assert logits.shape == targets.shape
    total = math.prod(logits.shape)
    assert total > 0

    # Free flatten (contiguous).  Pad only when the flat length is not
    # lane-aligned (or gives fewer than 8 rows); typical segmentation shapes
    # are 128-aligned so this is a no-op and no extra HBM pass is issued.
    # TODO(synk): handle the <128-element ragged tail with a manual-DMA
    # epilogue instead of this (rare) jnp.pad copy.
    x = jnp.reshape(logits, (-1,))
    t = jnp.reshape(targets, (-1,))
    padded = max(_round_up(total, LANES), 8 * LANES)
    if padded != total:
        x = jnp.pad(x, (0, padded - total))
        t = jnp.pad(t, (0, padded - total))

    rows = padded // LANES                    # >= 8
    x = x.reshape(rows, LANES)
    t = t.reshape(rows, LANES)

    full_rows = total // LANES                # fully valid rows
    tail_lanes = total % LANES                # valid lanes in the partial row

    # Block row count: multiple of 8 (for the tile-aligned accumulator fold),
    # never larger than the slab.
    br = min(_round_up(block_rows, 8), (rows // 8) * 8)
    total_blocks = pl.cdiv(rows, br)

    detected_cores = _num_tensorcores()
    n_splits = detected_cores if num_splits is None else num_splits
    n_splits = max(1, min(n_splits, total_blocks))
    bpc = pl.cdiv(total_blocks, n_splits)

    # Static: does ANY logical block need the (row, lane) validity mask?
    need_mask = ((padded != total)
                 or (rows % br != 0)
                 or (n_splits * bpc != total_blocks))
    last_block = total_blocks - 1

    def idx_map(i, j):
        # Clamp so no DMA ever targets a fully out-of-range block; duplicated
        # clamped blocks contribute exactly 0 through the gated in-kernel mask.
        return (jnp.minimum(i * bpc + j, last_block), 0)

    kernel = functools.partial(
        _focal_loss_kernel,
        block_rows=br,
        blocks_per_split=bpc,
        full_rows=full_rows,
        tail_lanes=tail_lanes,
        need_mask=need_mask,
    )

    # Guaranteed per-TensorCore split on multi-TC chips (v7x); plain parallel
    # if the caller forced an unusual split; benign arbitrary when unsplit.
    if n_splits > 1 and n_splits == detected_cores:
        split_sem = pltpu.CORE_PARALLEL
    elif n_splits > 1:
        split_sem = pltpu.PARALLEL
    else:
        split_sem = pltpu.ARBITRARY

    partials = pl.pallas_call(
        kernel,
        out_shape=jax.ShapeDtypeStruct((n_splits, 1), jnp.float32),
        grid_spec=pltpu.PrefetchScalarGridSpec(
            num_scalar_prefetch=0,
            grid=(n_splits, bpc),
            in_specs=[
                pl.BlockSpec((br, LANES), idx_map),
                pl.BlockSpec((br, LANES), idx_map),
            ],
            out_specs=pl.BlockSpec(
                (1, 1), lambda i, j: (i, 0), memory_space=pltpu.MemorySpace.SMEM
            ),
            scratch_shapes=[pltpu.VMEM((8, LANES), jnp.float32)],
        ),
        compiler_params=pltpu.CompilerParams(
            dimension_semantics=(split_sem, pltpu.ARBITRARY),
        ),
    )(x, t)

    # size_average=True -> mean over all original elements; _W_CONST is the
    # constant-folded alpha blend (exact because ALPHA == 0.5).
    return jnp.sum(partials) * (_W_CONST / total)


def _focal_loss_ref(logits, targets):
    """Pure-JAX reference mirroring the PyTorch code exactly."""
    n = logits.shape[0]
    x = jnp.reshape(logits, (n, -1)).astype(jnp.float32)
    t = jnp.reshape(targets, (n, -1)).astype(jnp.float32)
    p = jax.nn.sigmoid(x)
    pt = jnp.where(t == 0.0, 1.0 - p, p)
    w = ALPHA * t + (1 - ALPHA) * (1 - t)
    w = w * (1.0 - pt) ** GAMMA
    max_val = jnp.maximum(-x, 0.0)
    bce = x - x * t + max_val + jnp.log(jnp.exp(-max_val) + jnp.exp(-x - max_val))
    return jnp.mean(w * bce)


if __name__ == "__main__":
    key = jax.random.PRNGKey(0)
    k1, k2, k3, k4 = jax.random.split(key, 4)

    # NCHW logits and binary targets (lane-aligned: no padding, no mask path).
    N, C, H, W = 2, 4, 16, 16
    logits = jax.random.normal(k1, (N, C, H, W), dtype=jnp.float32)
    targets = jax.random.bernoulli(k2, p=0.3, shape=(N, C, H, W)).astype(jnp.float32)
    loss = jax.block_until_ready(focal_loss(logits, targets))
    ref = jax.block_until_ready(_focal_loss_ref(logits, targets))
    assert jnp.allclose(loss, ref, rtol=1e-5, atol=1e-6), (loss, ref)

    # Ragged shape: exercises the lane-pad + gated boundary-mask path.
    shape2 = (2, 3, 7, 5)
    logits2 = jax.random.normal(k3, shape2, dtype=jnp.float32)
    targets2 = jax.random.bernoulli(k4, p=0.4, shape=shape2).astype(jnp.float32)
    loss2 = jax.block_until_ready(focal_loss(logits2, targets2))
    ref2 = jax.block_until_ready(_focal_loss_ref(logits2, targets2))
    assert jnp.allclose(loss2, ref2, rtol=1e-5, atol=1e-6), (loss2, ref2)

    print("KERNEL_OK")
</pallas_src>

<mosaic_0001>
module attributes {stable_mosaic.version = 11 : i64} {
  func.func @_focal_loss_kernel(%arg0: i32, %arg1: i32, %arg2: memref<16x128xf32, #tpu.memory_space<vmem>>, %arg3: memref<16x128xf32, #tpu.memory_space<vmem>>, %arg4: memref<1x1xf32, #tpu.memory_space<smem>>, %arg5: memref<8x128xf32, #tpu.memory_space<vmem>>) attributes {dimension_semantics = [#tpu.dimension_semantics<arbitrary>, #tpu.dimension_semantics<arbitrary>], iteration_bounds = array<i64: 1, 1>, scalar_prefetch = 0 : i64, scratch_operands = 1 : i64, tpu.core_type = #tpu.core_type<tc>, window_params = [{transform_indices = @transform_0, window_bounds = array<i64: 16, 128>}, {transform_indices = @transform_1, window_bounds = array<i64: 16, 128>}, {transform_indices = @transform_2, window_bounds = array<i64: 1, 1>}]} {
    %c0_i32 = arith.constant 0 : i32
    %0 = arith.cmpi eq, %arg1, %c0_i32 : i32
    %1 = arith.extui %0 : i1 to i32
    %c0_i32_0 = arith.constant 0 : i32
    %2 = arith.cmpi ne, %1, %c0_i32_0 : i32
    scf.if %2 {
      %cst_17 = arith.constant 0.000000e+00 : f32
      %39 = vector.broadcast %cst_17 : f32 to vector<8x128xf32>
      %c0_18 = arith.constant 0 : index
      %c0_19 = arith.constant 0 : index
      %40 = vector.load %arg5[%c0_18, %c0_19] : memref<8x128xf32, #tpu.memory_space<vmem>>, vector<8x128xf32>
      tpu.vector_store %arg5[%c0_18, %c0_19], %39 {strides = array<i32>} : memref<8x128xf32, #tpu.memory_space<vmem>>, vector<8x128xf32>,
    } else {
    }
    %c0 = arith.constant 0 : index
    %c0_1 = arith.constant 0 : index
    %3 = vector.load %arg2[%c0, %c0_1] : memref<16x128xf32, #tpu.memory_space<vmem>>, vector<16x128xf32>
    %c0_2 = arith.constant 0 : index
    %c0_3 = arith.constant 0 : index
    %4 = vector.load %arg3[%c0_2, %c0_3] : memref<16x128xf32, #tpu.memory_space<vmem>>, vector<16x128xf32>
    %cst = arith.constant 0.000000e+00 : f32
    %5 = vector.broadcast %cst : f32 to vector<16x128xf32>
    %6 = arith.cmpf oeq, %4, %5 : vector<16x128xf32>
    %cst_4 = arith.constant 0.000000e+00 : f32
    %7 = vector.broadcast %cst_4 : f32 to vector<16x128xf32>
    %8 = arith.subf %7, %3 : vector<16x128xf32>
    %9 = arith.select %6, %3, %8 : vector<16x128xi1>, vector<16x128xf32>
    %10 = math.absf %3 : vector<16x128xf32>
    %cst_5 = arith.constant 0.000000e+00 : f32
    %11 = vector.broadcast %cst_5 : f32 to vector<16x128xf32>
    %12 = arith.subf %11, %10 : vector<16x128xf32>
    %13 = math.exp %12 : vector<16x128xf32>
    %cst_6 = arith.constant 1.000000e+00 : f32
    %14 = vector.broadcast %cst_6 : f32 to vector<16x128xf32>
    %15 = arith.addf %14, %13 : vector<16x128xf32>
    %16 = tpu.reciprocal %15 {approx = true} : vector<16x128xf32> -> vector<16x128xf32>
    %17 = arith.mulf %15, %16 : vector<16x128xf32>
    %cst_7 = arith.constant 2.000000e+00 : f32
    %18 = vector.broadcast %cst_7 : f32 to vector<16x128xf32>
    %19 = arith.subf %18, %17 : vector<16x128xf32>
    %20 = arith.mulf %16, %19 : vector<16x128xf32>
    %cst_8 = arith.constant 0.000000e+00 : f32
    %21 = vector.broadcast %cst_8 : f32 to vector<16x128xf32>
    %22 = arith.cmpf oge, %9, %21 : vector<16x128xf32>
    %23 = arith.mulf %13, %20 : vector<16x128xf32>
    %24 = arith.select %22, %20, %23 : vector<16x128xi1>, vector<16x128xf32>
    %cst_9 = arith.constant 0.000000e+00 : f32
    %25 = vector.broadcast %cst_9 : f32 to vector<16x128xf32>
    %26 = arith.maximumf %9, %25 : vector<16x128xf32>
    %27 = math.log %15 : vector<16x128xf32>
    %28 = arith.addf %26, %27 : vector<16x128xf32>
    %29 = arith.mulf %24, %24 : vector<16x128xf32>
    %30 = arith.mulf %29, %28 : vector<16x128xf32>
    %c0_10 = arith.constant 0 : index
    %c0_11 = arith.constant 0 : index
    %31 = vector.load %arg5[%c0_10, %c0_11] : memref<8x128xf32, #tpu.memory_space<vmem>>, vector<8x128xf32>
    %32 = vector.shape_cast %30 : vector<16x128xf32> to vector<2x8x128xf32>
    %cst_12 = arith.constant dense<0.000000e+00> : vector<8x128xf32>
    %33 = vector.multi_reduction <add>, %32, %cst_12 [0] : vector<2x8x128xf32> to vector<8x128xf32>
    %34 = arith.addf %31, %33 : vector<8x128xf32>
    %c0_13 = arith.constant 0 : index
    %c0_14 = arith.constant 0 : index
    %35 = vector.load %arg5[%c0_13, %c0_14] : memref<8x128xf32, #tpu.memory_space<vmem>>, vector<8x128xf32>
    tpu.vector_store %arg5[%c0_13, %c0_14], %34 {strides = array<i32>} : memref<8x128xf32, #tpu.memory_space<vmem>>, vector<8x128xf32>,
    %c0_i32_15 = arith.constant 0 : i32
    %36 = arith.cmpi eq, %arg1, %c0_i32_15 : i32
    %37 = arith.extui %36 : i1 to i32
    %c0_i32_16 = arith.constant 0 : i32
    %38 = arith.cmpi ne, %37, %c0_i32_16 : i32
    scf.if %38 {
      %c0_17 = arith.constant 0 : index
      %c0_18 = arith.constant 0 : index
      %39 = vector.load %arg5[%c0_17, %c0_18] : memref<8x128xf32, #tpu.memory_space<vmem>>, vector<8x128xf32>
      %40 = vector.shape_cast %39 : vector<8x128xf32> to vector<1x8x128xf32>
      %cst_19 = arith.constant dense<0.000000e+00> : vector<1xf32>
      %41 = vector.multi_reduction <add>, %40, %cst_19 [1, 2] : vector<1x8x128xf32> to vector<1xf32>
      %42 = vector.shape_cast %41 : vector<1xf32> to vector<1x1x1xf32>
      %43 = vector.extract %42[0, 0, 0] : f32 from vector<1x1x1xf32>
      %c0_20 = arith.constant 0 : index
      %c0_21 = arith.constant 0 : index
      %44 = memref.load %arg4[%c0_20, %c0_21] : memref<1x1xf32, #tpu.memory_space<smem>>
      memref.store %43, %arg4[%c0_20, %c0_21] : memref<1x1xf32, #tpu.memory_space<smem>>
    } else {
    }
    return
  }
  func.func @transform_0(%arg0: i32, %arg1: i32) -> (i32, i32) {
    %c1_i32 = arith.constant 1 : i32
    %0 = arith.muli %arg0, %c1_i32 : i32
    %1 = arith.addi %0, %arg1 : i32
    %c0_i32 = arith.constant 0 : i32
    %2 = arith.minsi %1, %c0_i32 : i32
    %c0_i32_0 = arith.constant 0 : i32
    %c0_i32_1 = arith.constant 0 : i32
    return %2, %c0_i32_0 : i32, i32
  }
  func.func @transform_1(%arg0: i32, %arg1: i32) -> (i32, i32) {
    %c1_i32 = arith.constant 1 : i32
    %0 = arith.muli %arg0, %c1_i32 : i32
    %1 = arith.addi %0, %arg1 : i32
    %c0_i32 = arith.constant 0 : i32
    %2 = arith.minsi %1, %c0_i32 : i32
    %c0_i32_0 = arith.constant 0 : i32
    %c0_i32_1 = arith.constant 0 : i32
    return %2, %c0_i32_0 : i32, i32
  }
  func.func @transform_2(%arg0: i32, %arg1: i32) -> (i32, i32) {
    %c0_i32 = arith.constant 0 : i32
    %c0_i32_0 = arith.constant 0 : i32
    return %arg0, %c0_i32 : i32, i32
  }
}

</mosaic_0001>

<bundles_post_ra>
// kernel: tpu_custom_call.1
= control target key start
LH: loop header
LB: loop body
LE: loop exit
PB: predicated region body
PF: predicated region fallthrough
CT: control target
= control target key end

     0   :  { %7 = vsyncpa [#allocation4], 0  ;;  %s284_s0 = inlined_call_operand.hbm [shape: f32[16,128], index: 0, kind: input, shape index: {}]   ;;  %s285_s1 = inlined_call_operand.hbm [shape: f32[16,128], index: 1, kind: input, shape index: {}]   ;;  %s286_s2 = inlined_call_operand.hbm [shape: f32[1,1], index: 2, kind: output, shape index: {}]  }
   0x1   :  { %8 = vsyncpa [#allocation7], 0 }
   0x2   :  { %9 = vsyncpa [#allocation5], 0  ;;  %s228_s9 = smov [#allocation3]   ;;  %s168_s13 = scalar_lea.hbm %s284_s0, 256 }
   0x3   :  { %s21_s10 = sshll.u32 %s228_s9, 4  ;;  %p169_p0 = scmp.ne.s32.totalorder %s284_s0, %s168_s13  ;;  %s22_s10 = int_to_ptr.vmem [resolvable:$true] %s21_s10 }
   0x4   :  { %p172_p1 = scmp.lt.u32.totalorder %s168_s13, %s284_s0 }
   0x6   :  { %p174_p2 = pnand %p172_p1, %p169_p0 }
   0x8   :  { %177 = shalt.err (!%p174_p2)
}
   0x9   :  { %s178_s18 = scalar_lea.vmem %s22_s10, 256  ;;  %p183_p4 = scmp.lt.s32.totalorder %s22_s10, %s22_s10 }
   0xa   :  { %p179_p3 = scmp.ne.s32.totalorder %s22_s10, %s178_s18  ;;  %p184_p5 = scmp.lt.s32.totalorder %s178_s18, %s178_s18 }
   0xc   :  { %p185_p6 = por %p184_p5, %p183_p4 }
   0xe   :  { %p186_p7 = pnand %p185_p6, %p179_p3 }
  0x10   :  { %189 = shalt.err (!%p186_p7)
}
  0x11   :  { %s229_s19 = smov 128   ;;  %s230_s20 = smov 8  }
  0x12   :  { %27 = dma.hbm_to_vmem [thread:$0]  %s284_s0, 256, %s22_s10, [#allocation4], %s229_s19, %s229_s19, %s230_s20  }
  0x13   :  { %s231_s23 = smov [#allocation6]   ;;  %s190_s27 = scalar_lea.hbm %s285_s1, 256 }
  0x14   :  { %s39_s24 = sshll.u32 %s231_s23, 4  ;;  %p191_p8 = scmp.ne.s32.totalorder %s285_s1, %s190_s27  ;;  %s40_s24 = int_to_ptr.vmem [resolvable:$true] %s39_s24 }
  0x15   :  { %p194_p9 = scmp.lt.u32.totalorder %s190_s27, %s285_s1 }
  0x17   :  { %p196_p10 = pnand %p194_p9, %p191_p8 }
  0x19   :  { %199 = shalt.err (!%p196_p10)
}
  0x1a   :  { %s200_s4 = scalar_lea.vmem %s40_s24, 256  ;;  %p205_p12 = scmp.lt.s32.totalorder %s40_s24, %s40_s24 }
  0x1b   :  { %p201_p11 = scmp.ne.s32.totalorder %s40_s24, %s200_s4  ;;  %p206_p13 = scmp.lt.s32.totalorder %s200_s4, %s200_s4 }
  0x1d   :  { %p207_p0 = por %p206_p13, %p205_p12 }
  0x1f   :  { %p208_p1 = pnand %p207_p0, %p201_p11 }
  0x21   :  { %211 = shalt.err (!%p208_p1)
}
  0x22   :  { %45 = dma.hbm_to_vmem [thread:$0]  %s285_s1, 256, %s40_s24, [#allocation7], %s229_s19, %s229_s19, %s230_s20  }
  0x23   :  { %222 = dma.done.wait [#allocation4], 256  }
  0x24   :  { %223 = vsyncadd [#allocation4], 4294967040 }
  0x25   :  { %224 = dma.done.wait [#allocation7], 256  }
  0x26   :  { %225 = vsyncadd [#allocation7], 4294967040  ;;  %v65_v0 = vld [vmem:[#allocation3] sm:$0xff]  ;;  %v66_v1 = vld [vmem:[#allocation3 + $0x8] sm:$0xff]  ;;  %s212_s8 = scalar_lea.hbm %s286_s2, 16 }
  0x27   :  { %v75_v2 = vand.u32 2147483647, %v65_v0  ;;  %v76_v3 = vand.u32 2147483647, %v66_v1  ;;  %v67_v12 = vld [vmem:[#allocation6] sm:$0xff]  ;;  %v68_v13 = vld [vmem:[#allocation6 + $0x8] sm:$0xff]  ;;  %p213_p2 = scmp.ne.s32.totalorder %s286_s2, %s212_s8  ;;  %p216_p3 = scmp.lt.u32.totalorder %s212_s8, %s286_s2 }
  0x28   :  { %v71_v14 = vsub.f32 0.0, %v65_v0  ;;  %vm69_vm0 = vcmp.eq.f32.partialorder %v67_v12, 0.0  ;;  %v72_v15 = vsub.f32 0.0, %v66_v1  ;;  %vm70_vm1 = vcmp.eq.f32.partialorder %v68_v13, 0.0 }
  0x29   :  { %v77_v4 = vsub.f32 0.0, %v75_v2  ;;  %v78_v5 = vsub.f32 0.0, %v76_v3  ;;  %p218_p4 = pnand %p216_p3, %p213_p2 }
  0x2a   :  { %v73_v18 = vsel %vm69_vm0, %v65_v0, %v71_v14  ;;  %v74_v21 = vsel %vm70_vm1, %v66_v1, %v72_v15 }
  0x2b   :  { %v79_v6 = vmul.f32 1.442695, %v77_v4  ;;  %v81_v7 = vmul.f32 1.442695, %v78_v5  ;;  %v99_v26 = vmax.f32 %v73_v18, 0.0  ;;  %v100_v29 = vmax.f32 %v74_v21, 0.0 }
  0x2c   :  { %vm93_vm2 = vcmp.ge.f32.partialorder %v73_v18, 0.0  ;;  %vm94_vm3 = vcmp.ge.f32.partialorder %v74_v21, 0.0 }
  0x2d   :  { %156 = vpow2.f32 %v79_v6 }
  0x2e   :  { %158 = vpow2.f32 %v81_v7 }
  0x37   :  { %v157_v8 = vpop.eup %156 }
  0x38   :  { %v159_v9 = vpop.eup %158  ;;  %v83_v10 = vadd.f32 1.0, %v157_v8 }
  0x39   :  { %v84_v11 = vadd.f32 1.0, %v159_v9 }
  0x3a   :  { %160 = vrcp.f32 %v83_v10 }
  0x3b   :  { %162 = vrcp.f32 %v84_v11 }
  0x3c   :  { %164 = vlog2.f32 %v83_v10 }
  0x3d   :  { %166 = vlog2.f32 %v84_v11 }
  0x44   :  { %v161_v16 = vpop.eup %160 }
  0x45   :  { %v163_v17 = vpop.eup %162  ;;  %v87_v19 = vmul.f32 %v161_v16, %v83_v10 }
  0x46   :  { %v165_v20 = vpop.eup %164  ;;  %v88_v22 = vmul.f32 %v163_v17, %v84_v11 }
  0x47   :  { %v167_v23 = vpop.eup %166  ;;  %v89_v24 = vsub.f32 2.0, %v87_v19  ;;  %v102_v27 = vmul.f32 0.6931472, %v165_v20 }
  0x48   :  { %v90_v25 = vsub.f32 2.0, %v88_v22  ;;  %v104_v30 = vmul.f32 0.6931472, %v167_v23 }
  0x49   :  { %v91_v28 = vmul.f32 %v161_v16, %v89_v24  ;;  %v105_v34 = vadd.f32 %v102_v27, %v99_v26 }
  0x4a   :  { %v92_v31 = vmul.f32 %v163_v17, %v90_v25  ;;  %v106_v36 = vadd.f32 %v104_v30, %v100_v29 }
  0x4b   :  { %v95_v32 = vmul.f32 %v157_v8, %v91_v28 }
  0x4c   :  { %v96_v33 = vmul.f32 %v159_v9, %v92_v31 }
  0x4d   :  { %v97_v35 = vsel %vm93_vm2, %v91_v28, %v95_v32 }
  0x4e   :  { %v98_v37 = vsel %vm94_vm3, %v92_v31, %v96_v33  ;;  %v107_v38 = vmul.f32 %v97_v35, %v97_v35 }
  0x4f   :  { %v108_v39 = vmul.f32 %v98_v37, %v98_v37 }
  0x50   :  { %v109_v40 = vmul.f32 %v107_v38, %v105_v34 }
  0x51   :  { %v110_v41 = vmul.f32 %v108_v39, %v106_v36 }
  0x53   :  { %v112_v42 = vadd.f32 %v110_v41, %v109_v40 }
  0x55   :  { %119 = vadd.xlane.f32.xlu0 %v112_v42 }
  0xe2   :  { %v120_v43 = vpop.xlane.xlu0 %119 }
  0xe3   :  { %v121_v44 = vrot.slane %v120_v43, 4 }
  0xe5   :  { %v122_v45 = vadd.f32 %v121_v44, %v120_v43 }
  0xe7   :  { %v123_v46 = vrot.slane %v122_v45, 2 }
  0xe9   :  { %v124_v47 = vadd.f32 %v123_v46, %v122_v45 }
  0xeb   :  { %v125_v48 = vrot.slane %v124_v47, 1 }
  0xed   :  { %v126_v49 = vadd.f32 %v125_v48, %v124_v47 }
  0xef   :  { %149 = vpush %v126_v49 }
 0x120   :  { %s150_s1 = spop %149 }
 0x121   :  { %129 = sst [smem:[#allocation8]] %s150_s1 }
 0x122   :  { %221 = shalt.err (!%p218_p4)
}
 0x123   :  { %s232_s13 = smov [#allocation8]  }
 0x124   :  { %137 = dma.smem_to_hbm %s232_s13, 16, %s286_s2, [#allocation5]  }
 0x125   :  { %226 = dma.done.wait [#allocation5], 16  }
 0x126   :  { %227 = vsyncadd [#allocation5], 4294967280 }
 0x127   :  { %141 = sfence }
 0x128   :  { %142 = vsyncpa [#allocation4], 1 }
 0x129   :  { %143 = vsyncpa [#allocation7], 1 }
 0x12a   :  { %144 = vsyncpa [#allocation5], 1 }

</bundles_post_ra>
